<compile_context>
chip_gen: v7x
topology: tpu7x:2x2x1
jax: 0.10.0
libtpu: 0.0.40
codegen_flags: <defaults>
</compile_context>

<pallas_src>
import jax
import jax.numpy as jnp
from jax import lax
from jax.experimental import pallas as pl
from jax.experimental.pallas import tpu as pltpu


def cross_attention_kernel(s1_ref, s2_ref, w_ref, p_ref, out_ref):
    B, L1, H = s1_ref.shape
    _, L2, _ = s2_ref.shape

    s1 = s1_ref[...]          # (B, L1, H)
    s2 = s2_ref[...]          # (B, L2, H)
    w_cat = w_ref[...]        # (2H, H): rows [w1; w2], PyTorch layout (y = x @ W.T + b)
    params = p_ref[...]       # (4, H):  rows [b1, b2, gamma, beta]
    b1 = params[0:1, :]
    b2 = params[1:2, :]
    gamma = params[2:3, :]
    beta = params[3:4, :]

    # ---- Both linear layers as ONE flattened MXU matmul.
    s1_2d = s1.reshape(B * L1, H)
    s2_2d = s2.reshape(B * L2, H)
    x_both = jnp.concatenate([s1_2d, s2_2d], axis=0)         # (B*(L1+L2), H)
    dn_lin = (((1,), (1,)), ((), ()))                         # contract H with W's 2nd axis == x @ W.T
    proj = lax.dot_general(x_both, w_cat, dn_lin,
                           preferred_element_type=jnp.float32)  # (B*(L1+L2), 2H)
    s1_emb2d = proj[:B * L1, 0:H] + b1                        # linear1(s1)
    s2_emb2d = proj[B * L1:, H:2 * H] + b2                    # linear2(s2)

    # ---- relu(linear2(s2) + s2), then LayerNorm over hidden (all f32)
    s2_emb2d = jnp.maximum(s2_emb2d + s2_2d, 0.0)
    mean = jnp.mean(s2_emb2d, axis=-1, keepdims=True)
    var = jnp.mean((s2_emb2d - mean) ** 2, axis=-1, keepdims=True)
    s2_norm2d = (s2_emb2d - mean) * lax.rsqrt(var + 1e-5)     # rsqrt -> EUP slot
    s2_norm2d = s2_norm2d * gamma + beta

    # ---- relu(s1 @ s2^T) -> (B, L1, L2)  (contract over H, batch over B)
    sim = lax.dot_general(s1, s2, (((2,), (2,)), ((0,), (0,))),
                          preferred_element_type=jnp.float32)
    sim = jnp.maximum(sim, 0.0)

    # ---- softmax over the *batch* axis (dim=0), faithful to the PyTorch code.
    # Exact divide kept on purpose: approx reciprocal (~1e-3 rel err) would
    # break the 1e-4 reference tolerance for no measurable gain here.
    m = jnp.max(sim, axis=0, keepdims=True)
    e = jnp.exp(sim - m)
    att = e / jnp.sum(e, axis=0, keepdims=True)               # (B, L1, L2)

    # ---- softmax(...).transpose(1, 2) @ s1_embedding -> (B, L2, H)
    s1_emb = s1_emb2d.reshape(B, L1, H)
    s1_att = lax.dot_general(att, s1_emb, (((1,), (1,)), ((0,), (0,))),
                             preferred_element_type=jnp.float32)

    # ---- Fused concat: single (B, L2, 2H) output written in two halves.
    out_ref[:, :, 0:H] = s1_att
    out_ref[:, :, H:2 * H] = s2_norm2d.reshape(B, L2, H)


@jax.jit
def cross_attention(s1, s2, w1, b1, w2, b2, gamma, beta):
    B, L1, H = s1.shape
    _, L2, _ = s2.shape

    # Pack small operands: one (2H, H) weight slab + one (4, H) vector slab
    # -> 4 input DMAs instead of 8 (each tiny input otherwise costs its own
    # DMA + semaphore and pads to a full (8,128) VMEM tile).
    w_cat = jnp.concatenate([w1, w2], axis=0)                 # (2H, H)
    params = jnp.stack([b1, b2, gamma, beta], axis=0)         # (4, H)

    vmem = pl.BlockSpec(memory_space=pltpu.MemorySpace.VMEM)

    # Advisory cost hint: fused projection matmul + similarity + readout.
    flops = 2 * (B * (L1 + L2) * H * 2 * H + 2 * B * L1 * L2 * H)
    transcendentals = B * L1 * L2 + B * L2                    # exp (softmax) + rsqrt (LN)
    bytes_accessed = 4 * (s1.size + s2.size + w_cat.size + params.size
                          + B * L2 * 2 * H)

    return pl.pallas_call(
        cross_attention_kernel,
        out_shape=jax.ShapeDtypeStruct((B, L2, 2 * H), jnp.float32),
        in_specs=[vmem, vmem, vmem, vmem],
        out_specs=vmem,
        cost_estimate=pl.CostEstimate(flops=flops,
                                      transcendentals=transcendentals,
                                      bytes_accessed=bytes_accessed),
    )(s1, s2, w_cat, params)


def cross_attention_ref(s1, s2, w1, b1, w2, b2, gamma, beta):
    """Pure-JAX reference mirroring the PyTorch forward pass."""
    s1_emb = s1 @ w1.T + b1
    s2_emb = s2 @ w2.T + b2
    s2_emb = jax.nn.relu(s2_emb + s2)
    mean = jnp.mean(s2_emb, axis=-1, keepdims=True)
    var = jnp.var(s2_emb, axis=-1, keepdims=True)
    s2_emb = (s2_emb - mean) / jnp.sqrt(var + 1e-5) * gamma + beta
    sim = jax.nn.relu(jnp.einsum('bik,bjk->bij', s1, s2))
    att = jax.nn.softmax(sim, axis=0).transpose(0, 2, 1)
    s1_att = jnp.einsum('bli,bih->blh', att, s1_emb)
    return jnp.concatenate([s1_att, s2_emb], axis=-1)


if __name__ == "__main__":
    B, L1, L2, H = 2, 8, 8, 32

    key = jax.random.PRNGKey(0)
    k_s1, k_s2, k_w1, k_b1, k_w2, k_b2, k_g, k_be = jax.random.split(key, 8)

    s1 = jax.random.normal(k_s1, (B, L1, H), dtype=jnp.float32)
    s2 = jax.random.normal(k_s2, (B, L2, H), dtype=jnp.float32)

    # Deterministic synthetic parameters (shapes per nn.Linear / nn.LayerNorm).
    scale = 1.0 / jnp.sqrt(jnp.float32(H))
    w1 = jax.random.uniform(k_w1, (H, H), jnp.float32, -scale, scale)
    b1 = jax.random.uniform(k_b1, (H,), jnp.float32, -scale, scale)
    w2 = jax.random.uniform(k_w2, (H, H), jnp.float32, -scale, scale)
    b2 = jax.random.uniform(k_b2, (H,), jnp.float32, -scale, scale)
    gamma = 1.0 + 0.1 * jax.random.normal(k_g, (H,), dtype=jnp.float32)
    beta = 0.1 * jax.random.normal(k_be, (H,), dtype=jnp.float32)

    out = cross_attention(s1, s2, w1, b1, w2, b2, gamma, beta)
    out = jax.block_until_ready(out)

    ref = cross_attention_ref(s1, s2, w1, b1, w2, b2, gamma, beta)
    assert out.shape == (B, L2, 2 * H), out.shape
    assert jnp.allclose(out, ref, atol=1e-4, rtol=1e-4), (
        float(jnp.max(jnp.abs(out - ref))))

    print("KERNEL_OK")
</pallas_src>

<mosaic_0001>
module attributes {stable_mosaic.version = 11 : i64} {
  func.func @cross_attention_kernel(%arg0: memref<2x8x32xf32, #tpu.memory_space<vmem>>, %arg1: memref<2x8x32xf32, #tpu.memory_space<vmem>>, %arg2: memref<64x32xf32, #tpu.memory_space<vmem>>, %arg3: memref<4x32xf32, #tpu.memory_space<vmem>>, %arg4: memref<2x8x64xf32, #tpu.memory_space<vmem>>) attributes {dimension_semantics = [], scalar_prefetch = 0 : i64, scratch_operands = 0 : i64, tpu.core_type = #tpu.core_type<tc>} {
    %c0 = arith.constant 0 : index
    %c0_0 = arith.constant 0 : index
    %c0_1 = arith.constant 0 : index
    %0 = vector.load %arg0[%c0, %c0_0, %c0_1] : memref<2x8x32xf32, #tpu.memory_space<vmem>>, vector<2x8x32xf32>
    %c0_2 = arith.constant 0 : index
    %c0_3 = arith.constant 0 : index
    %c0_4 = arith.constant 0 : index
    %1 = vector.load %arg1[%c0_2, %c0_3, %c0_4] : memref<2x8x32xf32, #tpu.memory_space<vmem>>, vector<2x8x32xf32>
    %c0_5 = arith.constant 0 : index
    %c0_6 = arith.constant 0 : index
    %2 = vector.load %arg2[%c0_5, %c0_6] : memref<64x32xf32, #tpu.memory_space<vmem>>, vector<64x32xf32>
    %c0_7 = arith.constant 0 : index
    %c0_8 = arith.constant 0 : index
    %3 = vector.load %arg3[%c0_7, %c0_8] : memref<4x32xf32, #tpu.memory_space<vmem>>, vector<4x32xf32>
    %4 = vector.extract_strided_slice %3 {offsets = [0, 0], sizes = [1, 32], strides = [1, 1]} : vector<4x32xf32> to vector<1x32xf32>
    %5 = vector.extract_strided_slice %3 {offsets = [1, 0], sizes = [1, 32], strides = [1, 1]} : vector<4x32xf32> to vector<1x32xf32>
    %6 = vector.extract_strided_slice %3 {offsets = [2, 0], sizes = [1, 32], strides = [1, 1]} : vector<4x32xf32> to vector<1x32xf32>
    %7 = vector.extract_strided_slice %3 {offsets = [3, 0], sizes = [1, 32], strides = [1, 1]} : vector<4x32xf32> to vector<1x32xf32>
    %8 = vector.shape_cast %0 : vector<2x8x32xf32> to vector<16x32xf32>
    %9 = vector.shape_cast %1 : vector<2x8x32xf32> to vector<16x32xf32>
    %10 = tpu.concatenate %8, %9 in 0 : vector<16x32xf32>, vector<16x32xf32> -> vector<32x32xf32>
    %cst = arith.constant dense<0.000000e+00> : vector<32x64xf32>
    %11 = tpu.matmul %10, %2, %cst {dimension_numbers = #tpu.dot_dimension_numbers<[1], [1], [0], [0], [0, 0, 1, 0], [], []>} : vector<32x32xf32>, vector<64x32xf32>, vector<32x64xf32> -> vector<32x64xf32>
    %12 = vector.extract_strided_slice %11 {offsets = [0, 0], sizes = [16, 32], strides = [1, 1]} : vector<32x64xf32> to vector<16x32xf32>
    %13 = vector.broadcast %4 : vector<1x32xf32> to vector<16x32xf32>
    %14 = arith.addf %12, %13 : vector<16x32xf32>
    %15 = vector.extract_strided_slice %11 {offsets = [16, 32], sizes = [16, 32], strides = [1, 1]} : vector<32x64xf32> to vector<16x32xf32>
    %16 = vector.broadcast %5 : vector<1x32xf32> to vector<16x32xf32>
    %17 = arith.addf %15, %16 : vector<16x32xf32>
    %18 = arith.addf %17, %9 : vector<16x32xf32>
    %cst_9 = arith.constant 0.000000e+00 : f32
    %19 = vector.broadcast %cst_9 : f32 to vector<16x32xf32>
    %20 = arith.maximumf %18, %19 : vector<16x32xf32>
    %cst_10 = arith.constant dense<0.000000e+00> : vector<16xf32>
    %21 = vector.multi_reduction <add>, %20, %cst_10 [1] : vector<16x32xf32> to vector<16xf32>
    %22 = vector.shape_cast %21 : vector<16xf32> to vector<16x1xf32>
    %cst_11 = arith.constant 3.200000e+01 : f32
    %23 = vector.broadcast %cst_11 : f32 to vector<16x1xf32>
    %24 = arith.divf %22, %23 : vector<16x1xf32>
    %25 = vector.broadcast %24 : vector<16x1xf32> to vector<16x32xf32>
    %26 = arith.subf %20, %25 : vector<16x32xf32>
    %27 = arith.mulf %26, %26 : vector<16x32xf32>
    %cst_12 = arith.constant dense<0.000000e+00> : vector<16xf32>
    %28 = vector.multi_reduction <add>, %27, %cst_12 [1] : vector<16x32xf32> to vector<16xf32>
    %29 = vector.shape_cast %28 : vector<16xf32> to vector<16x1xf32>
    %cst_13 = arith.constant 3.200000e+01 : f32
    %30 = vector.broadcast %cst_13 : f32 to vector<16x1xf32>
    %31 = arith.divf %29, %30 : vector<16x1xf32>
    %32 = vector.broadcast %24 : vector<16x1xf32> to vector<16x32xf32>
    %33 = arith.subf %20, %32 : vector<16x32xf32>
    %cst_14 = arith.constant 9.99999974E-6 : f32
    %34 = vector.broadcast %cst_14 : f32 to vector<16x1xf32>
    %35 = arith.addf %31, %34 : vector<16x1xf32>
    %36 = math.rsqrt %35 : vector<16x1xf32>
    %37 = vector.broadcast %36 : vector<16x1xf32> to vector<16x32xf32>
    %38 = arith.mulf %33, %37 : vector<16x32xf32>
    %39 = vector.broadcast %6 : vector<1x32xf32> to vector<16x32xf32>
    %40 = arith.mulf %38, %39 : vector<16x32xf32>
    %41 = vector.broadcast %7 : vector<1x32xf32> to vector<16x32xf32>
    %42 = arith.addf %40, %41 : vector<16x32xf32>
    %cst_15 = arith.constant dense<0.000000e+00> : vector<2x8x8xf32>
    %43 = tpu.matmul %0, %1, %cst_15 {dimension_numbers = #tpu.dot_dimension_numbers<[2], [2], [1], [1], [0, 0, 0, 1, 1, 1], [0], [0]>} : vector<2x8x32xf32>, vector<2x8x32xf32>, vector<2x8x8xf32> -> vector<2x8x8xf32>
    %cst_16 = arith.constant 0.000000e+00 : f32
    %44 = vector.broadcast %cst_16 : f32 to vector<2x8x8xf32>
    %45 = arith.maximumf %43, %44 : vector<2x8x8xf32>
    %cst_17 = arith.constant dense<0xFF800000> : vector<8x8xf32>
    %46 = vector.multi_reduction <maximumf>, %45, %cst_17 [0] : vector<2x8x8xf32> to vector<8x8xf32>
    %47 = vector.shape_cast %46 : vector<8x8xf32> to vector<1x8x8xf32>
    %48 = vector.broadcast %47 : vector<1x8x8xf32> to vector<2x8x8xf32>
    %49 = arith.subf %45, %48 : vector<2x8x8xf32>
    %50 = math.exp %49 : vector<2x8x8xf32>
    %cst_18 = arith.constant dense<0.000000e+00> : vector<8x8xf32>
    %51 = vector.multi_reduction <add>, %50, %cst_18 [0] : vector<2x8x8xf32> to vector<8x8xf32>
    %52 = vector.shape_cast %51 : vector<8x8xf32> to vector<1x8x8xf32>
    %53 = vector.broadcast %52 : vector<1x8x8xf32> to vector<2x8x8xf32>
    %54 = arith.divf %50, %53 : vector<2x8x8xf32>
    %55 = vector.shape_cast %14 : vector<16x32xf32> to vector<2x8x32xf32>
    %cst_19 = arith.constant dense<0.000000e+00> : vector<2x8x32xf32>
    %56 = tpu.matmul %54, %55, %cst_19 {dimension_numbers = #tpu.dot_dimension_numbers<[1], [1], [2], [2], [0, 0, 0, 2, 1, 2], [0], [0]>} : vector<2x8x8xf32>, vector<2x8x32xf32>, vector<2x8x32xf32> -> vector<2x8x32xf32>
    %c0_20 = arith.constant 0 : index
    %c0_21 = arith.constant 0 : index
    %c0_22 = arith.constant 0 : index
    %57 = vector.load %arg4[%c0_20, %c0_21, %c0_22] : memref<2x8x64xf32, #tpu.memory_space<vmem>>, vector<2x8x32xf32>
    tpu.vector_store %arg4[%c0_20, %c0_21, %c0_22], %56 {strides = array<i32>} : memref<2x8x64xf32, #tpu.memory_space<vmem>>, vector<2x8x32xf32>,
    %58 = vector.shape_cast %42 : vector<16x32xf32> to vector<2x8x32xf32>
    %c0_23 = arith.constant 0 : index
    %c0_24 = arith.constant 0 : index
    %c32 = arith.constant 32 : index
    %59 = vector.load %arg4[%c0_23, %c0_24, %c32] : memref<2x8x64xf32, #tpu.memory_space<vmem>>, vector<2x8x32xf32>
    tpu.vector_store %arg4[%c0_23, %c0_24, %c32], %58 {strides = array<i32>} : memref<2x8x64xf32, #tpu.memory_space<vmem>>, vector<2x8x32xf32>,
    return
  }
}

</mosaic_0001>

<bundles_post_ra>
// kernel: cross_attention.1
= control target key start
LH: loop header
LB: loop body
LE: loop exit
PB: predicated region body
PF: predicated region fallthrough
CT: control target
= control target key end

     0   :  { %vm31_vm0 = vcmask 261120   ;;  %v153_v3 = vlaneseq  ;;  %v776_v7 = vmov 0.0   ;;  %vm777_vm2 = vmmov 0   ;;  %s930_s0 = inlined_call_operand.vmem [shape: f32[2,8,32], index: 0, kind: input, shape index: {}]   ;;  %s931_s1 = inlined_call_operand.vmem [shape: f32[2,8,32], index: 1, kind: input, shape index: {}]   ;;  %s932_s2 = inlined_call_operand.vmem [shape: f32[64,32], index: 2, kind: input, shape index: {}]   ;;  %s933_s3 = inlined_call_operand.vmem [shape: f32[4,32], index: 3, kind: input, shape index: {}]   ;;  %s934_s4 = inlined_call_operand.hbm [shape: f32[2,8,64], index: 4, kind: output, shape index: {}]  }
   0x1   :  { %v22_v0 = vld [vmem:[%s932_s2] sm:$0xff]  ;;  %v23_v1 = vld [vmem:[%s932_s2 + $0x8] sm:$0xff]  ;;  %v24_v2 = vld [vmem:[%s932_s2 + $0x10] sm:$0xff]  ;;  %691 = vmatprep.subr.mxu1 %v776_v7  ;;  %693 = vmatprep.mubr.msk.f32.mxu1 %vm777_vm2, %v776_v7 }
   0x2   :  { %v711_v4 = vpack.c.bf16 %v23_v1, %v22_v0  ;;  %vm819_vm1 = vmpackc.low %vm31_vm0, %vm31_vm0  ;;  %v25_v6 = vld [vmem:[%s932_s2 + $0x18] sm:$0xff]  ;;  %v829_v9 = vshrl.u32 %v153_v3, 7  ;;  %v18_v10 = vld [vmem:[%s930_s0] sm:$0xff] }
   0x3   :  { %v717_v8 = vpack.c.bf16 %v25_v6, %v24_v2  ;;  %685 = vmatprep.mubr.msk.f32.mxu0 %vm31_vm0, %v18_v10  ;;  %v20_v11 = vld [vmem:[%s931_s1] sm:$0xff] }
   0x4   :  { %713 = vmatprep.subr.msk.bf16.mxu0 %vm819_vm1, %v711_v4  ;;  %v845_v12 = vld [vmem:[%s933_s3] sm:$0xf]  ;;  %v161_v13 = vsub.s32 1, %v829_v9 }
   0x5   :  { %716 = vmatpush3.bf16.xpose.msk.msra.mxu0 %vm819_vm1, %v711_v4 }
   0x6   :  { %9 = vsyncpa [#allocation3], 0  ;;  %719 = vmatprep.subr.msk.bf16.mxu0 %vm819_vm1, %v717_v8  ;;  %v21_v14 = vld [vmem:[%s931_s1 + $0x8] sm:$0xff]  ;;  %692 = vmatpush3.xpose.msk.msra.mxu1 %vm31_vm0, %v20_v11  ;;  %v26_v15 = vld [vmem:[%s932_s2 + $0x20] sm:$0xff]  ;;  %v162_v17 = vrot.slane %v845_v12, %v161_v13  ;;  %s778_s3 = smov 32   ;;  %vm384_vm3 = vcmask 64512  }
   0x7   :  { %v27_v16 = vld [vmem:[%s932_s2 + $0x28] sm:$0xff]  ;;  %696 = vmatprep.subr.mxu1 %v776_v7  ;;  %171 = vrot.lane.b32.xlu1 %v21_v14, %s778_s3  ;;  %v28_v20 = vld [vmem:[%s932_s2 + $0x30] sm:$0xff]  ;;  %v29_v21 = vld [vmem:[%s932_s2 + $0x38] sm:$0xff]  ;;  %v155_v36 = vsub.s32 0, %v829_v9  ;;  %s780_s2 = smov [#allocation2]   ;;  %vm612_vm4 = vcmask 523520  }
   0x8   :  { %164 = vrot.lane.b32.xlu0 %v162_v17, %s778_s3  ;;  %v723_v18 = vpack.c.bf16 %v27_v16, %v26_v15  ;;  %v19_v19 = vld [vmem:[%s930_s0 + $0x8] sm:$0xff]  ;;  %v729_v22 = vpack.c.bf16 %v29_v21, %v28_v20  ;;  %s779_s0 = smov 96   ;;  %v234_v21 = vsub.s32 3, %v829_v9  ;;  %s620_s14 = sshll.u32 %s780_s2, 4  ;;  %s621_s14 = int_to_ptr.vmem [resolvable:$true] %s620_s14 }
   0x9   :  { %694 = vmatmul.mubr.msk.f32.vlgmr.msra.gmra.mrb[0].mxu1 %vm31_vm0, %v18_v10  ;;  %v156_v38 = vrot.slane %v845_v12, %v155_v36  ;;  %s752_s15 = scalar_lea.vmem %s621_s14, 256  ;;  %p757_p1 = scmp.lt.s32.totalorder %s621_s14, %s621_s14 }
   0xa   :  { %697 = vmatpush3.xpose.msk.msra.mxu1 %vm31_vm0, %v21_v14  ;;  %698 = vmatprep.mubr.msk.f32.mxu1 %vm777_vm2, %v776_v7  ;;  %p753_p0 = scmp.ne.s32.totalorder %s621_s14, %s752_s15  ;;  %p758_p2 = scmp.lt.s32.totalorder %s752_s15, %s752_s15 }
   0xb   :  { %701 = vmatprep.subr.mxu1 %v776_v7 }
   0xc   :  { %169 = vrot.lane.b32.xlu0 %v20_v11, %s778_s3  ;;  %p759_p3 = por %p758_p2, %p757_p1 }
   0xd   :  { %722 = vmatpush3.bf16.xpose.msk.msra.mxu0 %vm819_vm1, %v717_v8  ;;  %699 = vmatmul.mubr.msk.f32.vlgmr.msra.gmra.mrb[2].mxu1 %vm31_vm0, %v19_v19 }
   0xe   :  { %725 = vmatprep.subr.msk.bf16.mxu0 %vm819_vm1, %v723_v18  ;;  %703 = vmatprep.mubr.msk.f32.mxu1 %vm777_vm2, %v776_v7  ;;  %p760_p4 = pnand %p759_p3, %p753_p0 }
  0x15   :  { %728 = vmatpush3.bf16.xpose.msk.msra.mxu0 %vm819_vm1, %v723_v18 }
  0x16   :  { %731 = vmatprep.subr.msk.bf16.mxu0 %vm819_vm1, %v729_v22 }
  0x1d   :  { %734 = vmatpush3.bf16.xpose.msk.msra.mxu0 %vm819_vm1, %v729_v22  ;;  %v224_v22 = vsub.s32 2, %v829_v9 }
  0x24   :  { %686 = vmatmul.mubr.msk.f32.vlgmr.msra.gmra.mrb[0].mxu0 %vm31_vm0, %v19_v19 }
  0x25   :  { %688 = vmatprep.mubr.msk.f32.mxu0 %vm31_vm0, %v20_v11 }
  0x28   :  { %689 = vmatmul.mubr.msk.f32.gmra.mrb[2].mxu0 %vm31_vm0, %v21_v14 }
  0x79   :  { %v172_v49 = vpop.permute.xlu1 %171 }
  0x7a   :  { %v165_v41 = vpop.permute.xlu0 %164 }
  0x7e   :  { %v170_v52 = vpop.permute.xlu0 %169 }
  0xdc   :  { %v308_v23 = vpop.f32.mrb[0].mxu1 }
  0xdd   :  { %v382_v24 = vmax.f32 %v308_v23, 0.0  ;;  %v695_v25 = vpop.f32.mrb[1].mxu1  ;;  %v235_v23 = vrot.slane %v845_v12, %v234_v21 }
  0xdf   :  { %v385_v27 = vsel %vm384_vm3, %v382_v24, -inf }
  0xe0   :  { %v378_v26 = vpop.f32.mrb[2].mxu1 }
  0xe1   :  { %v383_v28 = vmax.f32 %v378_v26, 0.0  ;;  %v700_v29 = vpop.f32.mrb[3].mxu1 }
  0xe3   :  { %v386_v30 = vsel %vm384_vm3, %v383_v28, -inf }
  0xe4   :  { %v387_v31 = vmax.f32 %v385_v27, %v386_v30 }
  0xe6   :  { %v388_v32 = vsub.f32 %v382_v24, %v387_v31  ;;  %v389_v33 = vsub.f32 %v383_v28, %v387_v31  ;;  %v225_v24 = vrot.slane %v845_v12, %v224_v22 }
  0xe8   :  { %v390_v34 = vmul.f32 1.442695, %v388_v32  ;;  %v392_v35 = vmul.f32 1.442695, %v389_v33 }
  0xea   :  { %742 = vpow2.f32 %v390_v34 }
  0xeb   :  { %744 = vpow2.f32 %v392_v35 }
  0xf4   :  { %v743_v37 = vpop.eup %742 }
  0xf5   :  { %v745_v39 = vpop.eup %744  ;;  %v394_v40 = vsel %vm384_vm3, %v743_v37, 0.0 }
  0xf6   :  { %v395_v42 = vsel %vm384_vm3, %v745_v39, 0.0 }
  0xf7   :  { %v687_v43 = vpop.f32.mrb[0].mxu0  ;;  %v396_v44 = vadd.f32 %v395_v42, %v394_v40 }
  0xf8   :  { %v158_v45 = vadd.f32 %v687_v43, %v156_v38  ;;  %v134_v46 = vpop.f32.mrb[1].mxu0 }
  0xf9   :  { %v157_v47 = vadd.f32 %v156_v38, %v134_v46  ;;  %746 = vrcp.f32 %v396_v44 }
  0xfb   :  { %v690_v48 = vpop.f32.mrb[2].mxu0  ;;  %702 = vmatpush3.msra.mxu1 %v157_v47 }
  0xfc   :  { %v168_v50 = vadd.f32 %v690_v48, %v165_v41  ;;  %v144_v51 = vpop.f32.mrb[3].mxu0  ;;  %706 = vmatprep.subr.mxu1 %v776_v7 }
  0xfd   :  { %v167_v53 = vadd.f32 %v165_v41, %v144_v51 }
  0xfe   :  { %v176_v54 = vadd.f32 %v172_v49, %v168_v50 }
  0xff   :  { %v175_v55 = vadd.f32 %v170_v52, %v167_v53 }
 0x100   :  { %v178_v56 = vmax.f32 %v176_v54, 0.0 }
 0x101   :  { %v177_v57 = vmax.f32 %v175_v55, 0.0 }
 0x102   :  { %183 = vrot.lane.b32.xlu0 %v178_v56, %s779_s0 }
 0x103   :  { %v747_v58 = vpop.eup %746  ;;  %181 = vrot.lane.b32.xlu1 %v177_v57, %s779_s0 }
 0x104   :  { %v398_v59 = vmul.f32 %v747_v58, %v743_v37  ;;  %v399_v60 = vmul.f32 %v747_v58, %v745_v39 }
 0x120   :  { %505 = vxpose.xlu0.b32.start.end [1/1] (short) (narrow) %v399_v60, 8 }
 0x12c   :  { %400 = vxpose.xlu1.b32.start.end [1/1] (short) (narrow) %v398_v59, 8 }
 0x174   :  { %v184_v61 = vpop.permute.xlu0 %183 }
 0x175   :  { %v182_v62 = vpop.permute.xlu1 %181  ;;  %v190_v63 = vsel %vm31_vm0, %v184_v61, 0.0 }
 0x176   :  { %191 = vadd.xlane.f32.xlu1 %v190_v63  ;;  %v187_v0 = vsel %vm31_vm0, %v182_v62, 0.0 }
 0x177   :  { %188 = vadd.xlane.f32.xlu0 %v187_v0 }
 0x1a0   :  { %v521_v2 = vpop.trf.xlu0 }
 0x1ac   :  { %v416_v1 = vpop.trf.xlu1 }
 0x1ad   :  { %704 = vmatmul.mubr.msk.f32.vlgmr.msra.gmra.mrb[4].mxu1 %vm384_vm3, %v416_v1 }
 0x1ae   :  { %707 = vmatpush3.msra.mxu1 %v158_v45  ;;  %708 = vmatprep.mubr.msk.f32.mxu1 %vm777_vm2, %v776_v7 }
 0x1b1   :  { %709 = vmatmul.mubr.msk.f32.vlgmr.msra.gmra.mrb[6].mxu1 %vm384_vm3, %v521_v2 }
 0x203   :  { %v192_v3 = vpop.xlane.xlu1 %191 }
 0x204   :  { %v195_v4 = vmul.f32 0.03125, %v192_v3  ;;  %v189_v5 = vpop.xlane.xlu0 %188 }
 0x205   :  { %v194_v6 = vmul.f32 0.03125, %v189_v5 }
 0x206   :  { %v197_v8 = vsub.f32 %v178_v56, %v195_v4 }
 0x207   :  { %v196_v10 = vsub.f32 %v177_v57, %v194_v6 }
 0x208   :  { %v199_v11 = vmul.f32 %v197_v8, %v197_v8 }
 0x209   :  { %v198_v13 = vmul.f32 %v196_v10, %v196_v10 }
 0x20a   :  { %204 = vrot.lane.b32.xlu1 %v199_v11, %s779_s0 }
 0x20b   :  { %202 = vrot.lane.b32.xlu0 %v198_v13, %s779_s0 }
 0x27c   :  { %v205_v14 = vpop.permute.xlu1 %204 }
 0x27d   :  { %v203_v15 = vpop.permute.xlu0 %202  ;;  %v211_v16 = vsel %vm31_vm0, %v205_v14, 0.0 }
 0x27e   :  { %212 = vadd.xlane.f32.xlu0 %v211_v16  ;;  %v208_v17 = vsel %vm31_vm0, %v203_v15, 0.0 }
 0x27f   :  { %209 = vadd.xlane.f32.xlu1 %v208_v17 }
 0x280   :  { %v501_v7 = vpop.f32.mrb[4].mxu1 }
 0x281   :  { %610 = vst.msk [vmem:[#allocation2] sm:$0xff] %vm31_vm0, %v501_v7  ;;  %v705_v18 = vpop.f32.mrb[5].mxu1 }
 0x284   :  { %v606_v19 = vpop.f32.mrb[6].mxu1 }
 0x285   :  { %611 = vst.msk [vmem:[#allocation2 + $0x8] sm:$0xff] %vm31_vm0, %v606_v19  ;;  %v710_v20 = vpop.f32.mrb[7].mxu1 }
 0x290   :  { %237 = vrot.lane.b32.xlu1 %v235_v23, %s778_s3 }
 0x294   :  { %227 = vrot.lane.b32.xlu0 %v225_v24, %s778_s3 }
 0x30b   :  { %v213_v25 = vpop.xlane.xlu0 %212 }
 0x30c   :  { %v215_v26 = vmul.f32 0.03125, %v213_v25  ;;  %v210_v27 = vpop.xlane.xlu1 %209 }
 0x30d   :  { %v214_v28 = vmul.f32 0.03125, %v210_v27 }
 0x30e   :  { %v217_v29 = vadd.f32 1e-05, %v215_v26 }
 0x30f   :  { %v216_v30 = vadd.f32 1e-05, %v214_v28  ;;  %v228_v32 = vpop.permute.xlu0 %227 }
 0x310   :  { %748 = vrsqrt.f32 %v217_v29  ;;  %v238_v35 = vpop.permute.xlu1 %237 }
 0x311   :  { %750 = vrsqrt.f32 %v216_v30 }
 0x31a   :  { %v749_v31 = vpop.eup %748 }
 0x31b   :  { %v751_v33 = vpop.eup %750  ;;  %v221_v9 = vmul.f32 %v749_v31, %v197_v8 }
 0x31c   :  { %v220_v34 = vmul.f32 %v751_v33, %v196_v10 }
 0x31d   :  { %v231_v36 = vmul.f32 %v228_v32, %v221_v9 }
 0x31e   :  { %v230_v12 = vmul.f32 %v228_v32, %v220_v34 }
 0x31f   :  { %v241_v37 = vadd.f32 %v238_v35, %v231_v36 }
 0x320   :  { %v240_v38 = vadd.f32 %v238_v35, %v230_v12 }
 0x321   :  { %614 = vst.msk [vmem:[#allocation2 + $0x8] sm:$0xff] %vm612_vm4, %v241_v37 }
 0x322   :  { %613 = vst.msk [vmem:[#allocation2] sm:$0xff] %vm612_vm4, %v240_v38 }
 0x323   :  { %763 = shalt.err (!%p760_p4)
}
 0x324   :  { %s764_s18 = scalar_lea.hbm %s934_s4, 256 }
 0x325   :  { %p765_p5 = scmp.ne.s32.totalorder %s934_s4, %s764_s18  ;;  %p768_p6 = scmp.lt.u32.totalorder %s764_s18, %s934_s4 }
 0x327   :  { %p770_p7 = pnand %p768_p6, %p765_p5 }
 0x329   :  { %773 = shalt.err (!%p770_p7)
}
 0x32a   :  { %s781_s23 = smov 128   ;;  %s782_s24 = smov 8  }
 0x32b   :  { %626 = dma.vmem_to_hbm [thread:$0]  %s621_s14, 256, %s934_s4, [#allocation3], %s781_s23, %s781_s23, %s782_s24  }
 0x32c   :  { %774 = dma.done.wait [#allocation3], 256  }
 0x32d   :  { %775 = vsyncadd [#allocation3], 4294967040 }
 0x32e   :  { %630 = vsyncpa [#allocation3], 1 }

</bundles_post_ra>
